<compile_context>
chip_gen: v7x
topology: tpu7x:2x2x1
jax: 0.10.0
libtpu: 0.0.40
codegen_flags: <defaults>
</compile_context>

<pallas_src>
import functools

import jax
import jax.numpy as jnp
from jax import lax
from jax.experimental import pallas as pl
from jax.experimental.pallas import tpu as pltpu


def _round_up(a, b):
    return -(-a // b) * b


def _vmem_capacity_bytes():
    """Physical VMEM per TensorCore; conservative (v7x-sized) fallback if the query fails."""
    try:
        cap = int(pltpu.get_tpu_info().vmem_capacity_bytes)
        if cap > 0:
            return cap
    except Exception:
        pass
    return 64 << 20


def _tv_partial_kernel(x_ref, out_ref, *, H_seg, W, L):
    """Partial TV sums for one chunk of flattened plane segments.

    x_ref  : (P, L_pad) block; each row is one H_seg x W plane segment flattened and
             zero-padded to L_pad (multiple of 128) lanes.
    out_ref: (1, 8, 128) f32 tile; g_h partial splatted into sublanes 0-3, g_w into 4-7
             (one aligned, unmasked lane-dense store per grid step).
    """
    x = x_ref[...].astype(jnp.float32)                       # (P, L_pad) in f32
    L_pad = x.shape[1]
    # (1, L_pad) masks broadcast over the P sublanes — one row of iota / % / compare.
    col = lax.broadcasted_iota(jnp.int32, (1, L_pad), 1)

    # Height diffs: bring x[i + W] to position i via an XLU lane rotation. Valid flat
    # positions are i < (H_seg - 1) * W (this also excludes the 128-lane zero padding).
    x_pW = pltpu.roll(x, shift=L_pad - W, axis=1)
    dh = jnp.where(col < (H_seg - 1) * W, x_pW - x, 0.0)
    g_h = jnp.sum(dh * dh)

    # Width diffs: bring x[i + 1] to position i. Valid where we are not in the last
    # column of a row (col % W != W - 1) and not in the zero padding (col < L).
    x_p1 = pltpu.roll(x, shift=L_pad - 1, axis=1)
    dw = jnp.where((col % W != (W - 1)) & (col < L), x_p1 - x, 0.0)
    g_w = jnp.sum(dw * dw)

    row = lax.broadcasted_iota(jnp.int32, (8, 128), 0)
    out_ref[...] = jnp.where(row < 4, g_h, g_w).reshape(out_ref.shape)


def tv_loss(x, tvloss_weight=0.5, batch_size=16, *, target_block_bytes=4 << 20):
    """Pallas TPU implementation of tvloss.forward.

    Matches the PyTorch module exactly: the loss is divided by the *configured*
    batch_size argument (not x.shape[0]) and divides by zero when H == 1 or W == 1.
    """
    B, C, H, W = x.shape
    N = B * C
    itemsize = jnp.dtype(x.dtype).itemsize
    # Native sublane packing of the input dtype: keep P a multiple of it so the input
    # DMA and f32 upcast stay on dense packed tiles.
    sub = {1: 32, 2: 16, 4: 8}.get(itemsize, 8)

    # Generation-aware VMEM budget (v7x: 64 MiB physical -> ~40 MiB; v5e/v6e: ~80 MiB).
    vmem_cap = (_vmem_capacity_bytes() * 5) // 8
    vmem_budget = max(4 << 20, vmem_cap - (2 << 20))

    # Per-row VMEM cost of one grid step: double-buffered input row + ~4 live full-width
    # f32 temporaries in the kernel (upcast x, rolled copy, masked diff, ...).
    TEMPS = 4
    per_row_bytes = lambda l_pad: l_pad * (2 * itemsize + 4 * TEMPS)

    # ---- segment height H_seg: split very large planes along H -----------------------
    # Largest flattened segment such that `sub` rows still fit the VMEM budget ...
    l_vmem_max = max(128, (vmem_budget // (sub * (2 * itemsize + 4 * TEMPS))) // 128 * 128)
    # ... and such that a `sub`-row block stays near the target DMA block size.
    l_target = max(128, target_block_bytes // (sub * itemsize))
    l_seg_max = min(l_vmem_max, l_target)

    if H * W <= l_seg_max:
        H_seg, S = H, 1
    else:
        h_seg_max = max(1, l_seg_max // W)
        H_seg = 1                      # prefer a divisor of H: no padded rows, no fixup
        for d in range(h_seg_max, 0, -1):
            if H % d == 0:
                H_seg = d
                break
        if H_seg < max(1, h_seg_max // 4):   # only tiny divisors exist -> pad instead
            H_seg = h_seg_max
        S = -(-H // H_seg)
    H_pad = S * H_seg
    L = H_seg * W
    L_pad = _round_up(L, 128)

    # ---- row-chunk size P and grid length G -------------------------------------------
    M = N * S                                         # total flattened segments
    M_sub = _round_up(M, sub)
    rows_vmem = max(sub, (vmem_budget // per_row_bytes(L_pad)) // sub * sub)
    rows_tgt = max(sub, (target_block_bytes // (L_pad * itemsize)) // sub * sub)
    P = min(rows_vmem, rows_tgt, M_sub)
    G = -(-M // P)
    if G == 1 and M > sub:
        # Keep at least two grid steps so the "parallel" axis feeds both v7x TensorCores.
        P = max(sub, min(_round_up(-(-M // 2), sub), ((M - 1) // sub) * sub))
        G = -(-M // P)
    M_pad = G * P

    # ---- build the (M_pad, L_pad) lane-dense operand ----------------------------------
    # Zero padding is exact: padded rows/lanes contribute 0 to both diff sums. The only
    # padding that adds a spurious term (the real/zero boundary inside the last segment
    # when H % H_seg != 0) is subtracted exactly below.
    xf = x.reshape(N, H, W)
    if H_pad != H:
        xf = jnp.pad(xf, ((0, 0), (0, H_pad - H), (0, 0)))
    xf = xf.reshape(M, L)
    if L_pad != L:
        xf = jnp.pad(xf, ((0, 0), (0, L_pad - L)))
    if M_pad != M:
        xf = jnp.pad(xf, ((0, M_pad - M), (0, 0)))

    kernel = functools.partial(_tv_partial_kernel, H_seg=H_seg, W=W, L=L)
    parts = pl.pallas_call(
        kernel,
        out_shape=jax.ShapeDtypeStruct((G, 8, 128), jnp.float32),
        grid_spec=pltpu.PrefetchScalarGridSpec(
            num_scalar_prefetch=0,
            grid=(G,),
            in_specs=[pl.BlockSpec((P, L_pad), lambda g: (g, 0))],
            out_specs=pl.BlockSpec((1, 8, 128), lambda g: (g, 0, 0)),
        ),
        compiler_params=pltpu.CompilerParams(
            dimension_semantics=("parallel",),
            vmem_limit_bytes=int(vmem_cap),
        ),
    )(xf)

    # Tiny final reduction of per-chunk partials in plain JAX.
    g_h = jnp.sum(parts[:, 0, 0])
    g_w = jnp.sum(parts[:, 4, 0])

    if S > 1:
        # Cross-segment height diffs (rows s*H_seg-1 -> s*H_seg, s = 1..S-1): a handful
        # of rows per plane, computed on tiny slices.
        top = x[:, :, H_seg::H_seg, :][:, :, : S - 1, :].astype(jnp.float32)
        bot = x[:, :, H_seg - 1::H_seg, :][:, :, : S - 1, :].astype(jnp.float32)
        g_h = g_h + jnp.sum(jnp.square(top - bot))
        if H_pad != H:
            # The kernel counted the diff between real row H-1 and the first zero pad
            # row inside the last segment; that spurious term is exactly ||x[H-1,:]||^2.
            last = x[:, :, H - 1, :].astype(jnp.float32)
            g_h = g_h - jnp.sum(jnp.square(last))

    g_h_size = float(C * (H - 1) * W)   # torch total_size(): channels * spatial (batch excluded)
    g_w_size = float(C * H * (W - 1))
    return tvloss_weight * (g_h / g_h_size + g_w / g_w_size) / float(batch_size)


def _tv_loss_ref(x, tvloss_weight=0.5, batch_size=16):
    x = x.astype(jnp.float32)
    B, C, H, W = x.shape
    g_h_size = C * (H - 1) * W
    g_w_size = C * H * (W - 1)
    g_h = jnp.sum(jnp.square(x[:, :, 1:, :] - x[:, :, :-1, :]))
    g_w = jnp.sum(jnp.square(x[:, :, :, 1:] - x[:, :, :, :-1]))
    return tvloss_weight * (g_h / g_h_size + g_w / g_w_size) / float(batch_size)


if __name__ == "__main__":
    k0, k1 = jax.random.split(jax.random.PRNGKey(0), 2)

    # 1) Main small-shape check (typical NCHW input for the module).
    x = jax.random.normal(k0, (2, 4, 16, 16), dtype=jnp.float32)
    ref = _tv_loss_ref(x, tvloss_weight=0.5, batch_size=16)
    loss = jax.block_until_ready(tv_loss(x, tvloss_weight=0.5, batch_size=16))
    assert jnp.allclose(loss, ref, rtol=1e-5, atol=1e-6), (loss, ref)

    # 2) Force the plane-splitting path (divisor case: H_seg = 8 divides H = 16, G = 2).
    loss2 = jax.block_until_ready(tv_loss(x, 0.5, 16, target_block_bytes=4096))
    assert jnp.allclose(loss2, ref, rtol=1e-5, atol=1e-6), (loss2, ref)

    # 3) Force the plane-splitting path with H padding + exact correction (H = 19).
    x3 = jax.random.normal(k1, (2, 3, 19, 16), dtype=jnp.float32)
    ref3 = _tv_loss_ref(x3, 0.5, 16)
    loss3 = jax.block_until_ready(tv_loss(x3, 0.5, 16, target_block_bytes=4096))
    assert jnp.allclose(loss3, ref3, rtol=1e-5, atol=1e-6), (loss3, ref3)

    # 4) bf16 input: exercises the 16-sublane packing path (P multiple of 16).
    xb = x.astype(jnp.bfloat16)
    refb = _tv_loss_ref(xb, 0.5, 16)
    lossb = jax.block_until_ready(tv_loss(xb, 0.5, 16))
    assert jnp.allclose(lossb, refb, rtol=1e-4, atol=1e-5), (lossb, refb)

    print("KERNEL_OK")
</pallas_src>

<mosaic_0001>
module attributes {stable_mosaic.version = 11 : i64} {
  func.func @_tv_partial_kernel(%arg0: i32, %arg1: memref<8x256xf32, #tpu.memory_space<vmem>>, %arg2: memref<1x8x128xf32, #tpu.memory_space<vmem>>) attributes {dimension_semantics = [#tpu.dimension_semantics<parallel>], iteration_bounds = array<i64: 1>, scalar_prefetch = 0 : i64, scratch_operands = 0 : i64, tpu.core_type = #tpu.core_type<tc>, window_params = [{transform_indices = @transform_0, window_bounds = array<i64: 8, 256>}, {transform_indices = @transform_1, window_bounds = array<i64: 1, 8, 128>}]} {
    %c0 = arith.constant 0 : index
    %c0_0 = arith.constant 0 : index
    %0 = vector.load %arg1[%c0, %c0_0] : memref<8x256xf32, #tpu.memory_space<vmem>>, vector<8x256xf32>
    %1 = tpu.iota {dimensions = array<i32: 1>} : vector<1x256xi32>
    %c240_i32 = arith.constant 240 : i32
    %2 = tpu.dynamic_rotate %0 by %c240_i32 dim 1 : vector<8x256xf32>, i32 -> vector<8x256xf32>
    %c240_i32_1 = arith.constant 240 : i32
    %3 = vector.broadcast %c240_i32_1 : i32 to vector<1x256xi32>
    %4 = arith.cmpi slt, %1, %3 : vector<1x256xi32>
    %5 = arith.subf %2, %0 : vector<8x256xf32>
    %cst = arith.constant 0.000000e+00 : f32
    %6 = vector.shape_cast %4 : vector<1x256xi1> to vector<1x256xi1>
    %7 = vector.broadcast %6 : vector<1x256xi1> to vector<8x256xi1>
    %8 = vector.broadcast %cst : f32 to vector<8x256xf32>
    %9 = arith.select %7, %5, %8 : vector<8x256xi1>, vector<8x256xf32>
    %10 = arith.mulf %9, %9 : vector<8x256xf32>
    %11 = vector.shape_cast %10 : vector<8x256xf32> to vector<1x8x256xf32>
    %cst_2 = arith.constant dense<0.000000e+00> : vector<1xf32>
    %12 = vector.multi_reduction <add>, %11, %cst_2 [1, 2] : vector<1x8x256xf32> to vector<1xf32>
    %13 = vector.shape_cast %12 : vector<1xf32> to vector<1x1x1xf32>
    %14 = vector.extract %13[0, 0, 0] : f32 from vector<1x1x1xf32>
    %c255_i32 = arith.constant 255 : i32
    %15 = tpu.dynamic_rotate %0 by %c255_i32 dim 1 : vector<8x256xf32>, i32 -> vector<8x256xf32>
    %c16_i32 = arith.constant 16 : i32
    %c0_i32 = arith.constant 0 : i32
    %16 = arith.cmpi eq, %c16_i32, %c0_i32 : i32
    %c1_i32 = arith.constant 1 : i32
    %17 = arith.select %16, %c1_i32, %c16_i32 : i32
    %18 = vector.broadcast %17 : i32 to vector<1x256xi32>
    %19 = arith.remsi %1, %18 : vector<1x256xi32>
    %c0_i32_3 = arith.constant 0 : i32
    %20 = vector.broadcast %c0_i32_3 : i32 to vector<1x256xi32>
    %21 = arith.cmpi ne, %19, %20 : vector<1x256xi32>
    %c0_i32_4 = arith.constant 0 : i32
    %22 = vector.broadcast %c0_i32_4 : i32 to vector<1x256xi32>
    %23 = arith.cmpi slt, %19, %22 : vector<1x256xi32>
    %c0_i32_5 = arith.constant 0 : i32
    %24 = arith.cmpi slt, %17, %c0_i32_5 : i32
    %25 = vector.broadcast %24 : i1 to vector<1x256xi1>
    %26 = vector.broadcast %25 : vector<1x256xi1> to vector<1x256xi1>
    %27 = arith.xori %23, %26 : vector<1x256xi1>
    %28 = arith.andi %27, %21 : vector<1x256xi1>
    %29 = vector.broadcast %17 : i32 to vector<1x256xi32>
    %30 = arith.addi %19, %29 : vector<1x256xi32>
    %31 = arith.select %28, %30, %19 : vector<1x256xi1>, vector<1x256xi32>
    %c15_i32 = arith.constant 15 : i32
    %32 = vector.broadcast %c15_i32 : i32 to vector<1x256xi32>
    %33 = arith.cmpi ne, %31, %32 : vector<1x256xi32>
    %c256_i32 = arith.constant 256 : i32
    %34 = vector.broadcast %c256_i32 : i32 to vector<1x256xi32>
    %35 = arith.cmpi slt, %1, %34 : vector<1x256xi32>
    %36 = arith.andi %33, %35 : vector<1x256xi1>
    %37 = arith.subf %15, %0 : vector<8x256xf32>
    %cst_6 = arith.constant 0.000000e+00 : f32
    %38 = vector.shape_cast %36 : vector<1x256xi1> to vector<1x256xi1>
    %39 = vector.broadcast %38 : vector<1x256xi1> to vector<8x256xi1>
    %40 = vector.broadcast %cst_6 : f32 to vector<8x256xf32>
    %41 = arith.select %39, %37, %40 : vector<8x256xi1>, vector<8x256xf32>
    %42 = arith.mulf %41, %41 : vector<8x256xf32>
    %43 = vector.shape_cast %42 : vector<8x256xf32> to vector<1x8x256xf32>
    %cst_7 = arith.constant dense<0.000000e+00> : vector<1xf32>
    %44 = vector.multi_reduction <add>, %43, %cst_7 [1, 2] : vector<1x8x256xf32> to vector<1xf32>
    %45 = vector.shape_cast %44 : vector<1xf32> to vector<1x1x1xf32>
    %46 = vector.extract %45[0, 0, 0] : f32 from vector<1x1x1xf32>
    %47 = tpu.iota {dimensions = array<i32: 0>} : vector<8x128xi32>
    %c4_i32 = arith.constant 4 : i32
    %48 = vector.broadcast %c4_i32 : i32 to vector<8x128xi32>
    %49 = arith.cmpi slt, %47, %48 : vector<8x128xi32>
    %50 = vector.broadcast %14 : f32 to vector<8x128xf32>
    %51 = vector.broadcast %46 : f32 to vector<8x128xf32>
    %52 = arith.select %49, %50, %51 : vector<8x128xi1>, vector<8x128xf32>
    %53 = vector.shape_cast %52 : vector<8x128xf32> to vector<1x8x128xf32>
    %c0_8 = arith.constant 0 : index
    %c0_9 = arith.constant 0 : index
    %c0_10 = arith.constant 0 : index
    %54 = vector.load %arg2[%c0_8, %c0_9, %c0_10] : memref<1x8x128xf32, #tpu.memory_space<vmem>>, vector<1x8x128xf32>
    tpu.vector_store %arg2[%c0_8, %c0_9, %c0_10], %53 {strides = array<i32>} : memref<1x8x128xf32, #tpu.memory_space<vmem>>, vector<1x8x128xf32>,
    return
  }
  func.func @transform_0(%arg0: i32) -> (i32, i32) {
    %c0_i32 = arith.constant 0 : i32
    %c0_i32_0 = arith.constant 0 : i32
    return %arg0, %c0_i32 : i32, i32
  }
  func.func @transform_1(%arg0: i32) -> (i32, i32, i32) {
    %c0_i32 = arith.constant 0 : i32
    %c0_i32_0 = arith.constant 0 : i32
    %c0_i32_1 = arith.constant 0 : i32
    return %arg0, %c0_i32, %c0_i32_0 : i32, i32, i32
  }
}

</mosaic_0001>

<bundles_post_ra>
// kernel: tpu_custom_call.1
= control target key start
LH: loop header
LB: loop body
LE: loop exit
PB: predicated region body
PF: predicated region fallthrough
CT: control target
= control target key end

     0   :  { %6 = vsyncpa [#allocation3], 0  ;;  %s228_s0 = inlined_call_operand.hbm [shape: f32[8,256], index: 0, kind: input, shape index: {}]   ;;  %s229_s1 = inlined_call_operand.hbm [shape: f32[1,8,128], index: 1, kind: output, shape index: {}]  }
   0x1   :  { %7 = vsyncpa [#allocation4], 0  ;;  %s190_s6 = smov [#allocation2]   ;;  %s142_s10 = scalar_lea.hbm %s228_s0, 256 }
   0x2   :  { %s14_s7 = sshll.u32 %s190_s6, 4  ;;  %p143_p0 = scmp.ne.s32.totalorder %s228_s0, %s142_s10  ;;  %s15_s7 = int_to_ptr.vmem [resolvable:$true] %s14_s7 }
   0x3   :  { %p146_p1 = scmp.lt.u32.totalorder %s142_s10, %s228_s0 }
   0x5   :  { %p148_p2 = pnand %p146_p1, %p143_p0 }
   0x7   :  { %151 = shalt.err (!%p148_p2)
}
   0x8   :  { %s152_s15 = scalar_lea.vmem %s15_s7, 256  ;;  %p157_p4 = scmp.lt.s32.totalorder %s15_s7, %s15_s7 }
   0x9   :  { %p153_p3 = scmp.ne.s32.totalorder %s15_s7, %s152_s15  ;;  %p158_p5 = scmp.lt.s32.totalorder %s152_s15, %s152_s15 }
   0xb   :  { %p159_p6 = por %p158_p5, %p157_p4 }
   0xd   :  { %p160_p7 = pnand %p159_p6, %p153_p3 }
   0xf   :  { %163 = shalt.err (!%p160_p7)
}
  0x10   :  { %17 = dma.hbm_to_vmem [thread:$0]  %s228_s0, 256, %s15_s7, [#allocation3]  }
  0x11   :  { %186 = dma.done.wait [#allocation3], 256  }
  0x12   :  { %187 = vsyncadd [#allocation3], 4294967040  ;;  %v21_v0 = vld [vmem:[#allocation2] sm:$0xff]  ;;  %s191_s18 = smov 127   ;;  %s192_s19 = smov 112   ;;  %v22_v1 = vld [vmem:[#allocation2 + $0x8] sm:$0xff]  ;;  %v23_v2 = vlaneseq }
  0x13   :  { %55 = vrot.lane.b32.xlu1 %v21_v0, %s191_s18  ;;  %26 = vrot.lane.b32.xlu0 %v21_v0, %s192_s19  ;;  %s193_s0 = smov [#allocation5]  }
  0x14   :  { %v24_v3 = vand.u32 127, %v23_v2  ;;  %v113_v42 = vshrl.u32 %v23_v2, 7  ;;  %s125_s20 = sshll.u32 %s193_s0, 4  ;;  %s126_s20 = int_to_ptr.vmem [resolvable:$true] %s125_s20 }
  0x15   :  { %s164_s23 = scalar_lea.vmem %s126_s20, 128  ;;  %p169_p9 = scmp.lt.s32.totalorder %s126_s20, %s126_s20 }
  0x16   :  { %v25_v4 = vadd.s32 128, %v24_v3  ;;  %v66_v7 = vand.u32 15, %v24_v3  ;;  %vm59_vm0 = vcmp.lt.s32.totalorder %v24_v3, 127  ;;  %vm30_vm1 = vcmp.lt.s32.totalorder %v24_v3, 112  ;;  %p165_p8 = scmp.ne.s32.totalorder %s126_s20, %s164_s23  ;;  %p170_p10 = scmp.lt.s32.totalorder %s164_s23, %s164_s23 }
  0x17   :  { %57 = vrot.lane.b32.xlu1 %v22_v1, %s191_s18  ;;  %28 = vrot.lane.b32.xlu0 %v22_v1, %s192_s19  ;;  %vm114_vm5 = vcmp.lt.s32.totalorder %v113_v42, 4 }
  0x18   :  { %v73_v8 = vand.u32 15, %v25_v4  ;;  %vm86_vm2 = vcmp.ne.s32.totalorder %v66_v7, 15  ;;  %vm34_vm4 = vcmp.lt.s32.totalorder %v25_v4, 240  ;;  %p171_p11 = por %p170_p10, %p169_p9 }
  0x1a   :  { %vm87_vm3 = vcmp.ne.s32.totalorder %v73_v8, 15  ;;  %p172_p12 = pnand %p171_p11, %p165_p8 }
  0x85   :  { %v56_v5 = vpop.permute.xlu1 %55  ;;  %v27_v6 = vpop.permute.xlu0 %26 }
  0x89   :  { %v58_v9 = vpop.permute.xlu1 %57  ;;  %v29_v10 = vpop.permute.xlu0 %28 }
  0x8a   :  { %v60_v11 = vsel %vm59_vm0, %v56_v5, %v58_v9  ;;  %v61_v12 = vsel %vm59_vm0, %v58_v9, %v56_v5  ;;  %v31_v13 = vsel %vm30_vm1, %v27_v6, %v29_v10  ;;  %v32_v14 = vsel %vm30_vm1, %v29_v10, %v27_v6 }
  0x8b   :  { %v92_v15 = vsub.f32 %v60_v11, %v21_v0  ;;  %v93_v16 = vsub.f32 %v61_v12, %v22_v1  ;;  %v35_v17 = vsub.f32 %v31_v13, %v21_v0  ;;  %v36_v18 = vsub.f32 %v32_v14, %v22_v1 }
  0x8d   :  { %v43_v19 = vmul.f32 %v35_v17, %v35_v17  ;;  %v98_v20 = vsel %vm86_vm2, %v92_v15, 0.0  ;;  %v99_v21 = vsel %vm87_vm3, %v93_v16, 0.0  ;;  %v42_v22 = vsel %vm34_vm4, %v36_v18, 0.0 }
  0x8e   :  { %v100_v23 = vmul.f32 %v98_v20, %v98_v20  ;;  %v101_v24 = vmul.f32 %v99_v21, %v99_v21  ;;  %v44_v25 = vmul.f32 %v42_v22, %v42_v22 }
  0x90   :  { %v102_v26 = vadd.f32 %v101_v24, %v100_v23  ;;  %v45_v27 = vadd.f32 %v44_v25, %v43_v19 }
  0x92   :  { %103 = vadd.xlane.f32.xlu1 %v102_v26  ;;  %46 = vadd.xlane.f32.xlu0 %v45_v27 }
 0x11f   :  { %v104_v28 = vpop.xlane.xlu1 %103  ;;  %v47_v29 = vpop.xlane.xlu0 %46 }
 0x120   :  { %v105_v30 = vrot.slane %v104_v28, 4  ;;  %v48_v31 = vrot.slane %v47_v29, 4 }
 0x122   :  { %v106_v32 = vadd.f32 %v105_v30, %v104_v28  ;;  %v49_v33 = vadd.f32 %v48_v31, %v47_v29 }
 0x124   :  { %v107_v34 = vrot.slane %v106_v32, 2  ;;  %v50_v35 = vrot.slane %v49_v33, 2 }
 0x126   :  { %v108_v36 = vadd.f32 %v107_v34, %v106_v32  ;;  %v51_v37 = vadd.f32 %v50_v35, %v49_v33 }
 0x128   :  { %v52_v38 = vrot.slane %v51_v37, 1  ;;  %v109_v39 = vrot.slane %v108_v36, 1 }
 0x12a   :  { %v53_v40 = vadd.f32 %v52_v38, %v51_v37  ;;  %v110_v41 = vadd.f32 %v109_v39, %v108_v36 }
 0x12c   :  { %134 = vpush %v53_v40 }
 0x12d   :  { %136 = vpush %v110_v41 }
 0x15d   :  { %s135_s21 = spop %134 }
 0x15e   :  { %v115_v43 = vstv %s135_s21  ;;  %s137_s22 = spop %136 }
 0x15f   :  { %v116_v44 = vstv %s137_s22 }
 0x160   :  { %v117_v45 = vsel %vm114_vm5, %v115_v43, %v116_v44 }
 0x161   :  { %118 = vst [vmem:[#allocation5] sm:$0xff] %v117_v45 }
 0x162   :  { %175 = shalt.err (!%p172_p12)
}
 0x163   :  { %s176_s26 = scalar_lea.hbm %s229_s1, 128 }
 0x164   :  { %p177_p13 = scmp.ne.s32.totalorder %s229_s1, %s176_s26  ;;  %p180_p0 = scmp.lt.u32.totalorder %s176_s26, %s229_s1 }
 0x166   :  { %p182_p1 = pnand %p180_p0, %p177_p13 }
 0x168   :  { %185 = shalt.err (!%p182_p1)
}
 0x169   :  { %128 = dma.vmem_to_hbm [thread:$0]  %s126_s20, 128, %s229_s1, [#allocation4]  }
 0x16a   :  { %188 = dma.done.wait [#allocation4], 128  }
 0x16b   :  { %189 = vsyncadd [#allocation4], 4294967168 }
 0x16c   :  { %132 = vsyncpa [#allocation3], 1 }
 0x16d   :  { %133 = vsyncpa [#allocation4], 1 }

</bundles_post_ra>
